<compile_context>
chip_gen: v7x
topology: tpu7x:2x2x1
jax: 0.10.0
libtpu: 0.0.40
codegen_flags: <defaults>
</compile_context>

<pallas_src>
import jax
import jax.numpy as jnp
from jax.experimental import pallas as pl
from jax.experimental.pallas import tpu as pltpu


def linear_stack_kernel(x_ref, wt_ref, b_ref, o_ref):
    """out[r] = x @ wt + b for r in {0,1,2}; single block, single grid step."""
    # Canonical (M,K) x (K,N) contraction -> MXU, f32 accumulation.
    y = jax.lax.dot_general(
        x_ref[...],
        wt_ref[...],
        dimension_numbers=(((1,), (0,)), ((), ())),
        preferred_element_type=jnp.float32,
    )
    y = (y + b_ref[...]).astype(o_ref.dtype)
    # torch.stack([y, y, y], dim=0) done in-kernel: 3 tiny stores, no extra
    # XLA op in the wrapper.
    o_ref[0, :, :] = y
    o_ref[1, :, :] = y
    o_ref[2, :, :] = y


@jax.jit
def linear_stack(x, w, b):
    """Computes stack([x @ w.T + b] * 3, axis=0) with one Pallas kernel call.

    x: (M, K) input, w: (N, K) torch-layout weight, b: (N,) bias.
    """
    M, K = x.shape
    N, _ = w.shape

    wt = w.T               # (K, N): canonical MXU feed order, no in-kernel transpose
    b2 = b.reshape(1, N)   # 2D for a clean TPU vector layout

    return pl.pallas_call(
        linear_stack_kernel,
        out_shape=jax.ShapeDtypeStruct((3, M, N), x.dtype),
        grid=(1,),
        # Full-array blocks: exempt from the (8,128) divisibility rule; Mosaic
        # pads internally, so no wrapper-side pad/slice dispatches.
        in_specs=[
            pl.BlockSpec((M, K), lambda i: (0, 0)),
            pl.BlockSpec((K, N), lambda i: (0, 0)),
            pl.BlockSpec((1, N), lambda i: (0, 0)),
        ],
        out_specs=pl.BlockSpec((3, M, N), lambda i: (0, 0, 0)),
        compiler_params=pltpu.CompilerParams(
            dimension_semantics=("arbitrary",),
            vmem_limit_bytes=32 * 1024 * 1024,
        ),
    )(x, wt, b2)
    # TODO(synk): for large (M, K, N) reuse a tiled grid (tm=256 on v6e/v7x,
    # tm=128 on v5e) with an f32 VMEM accumulator; not needed for Linear(2, 3).


if __name__ == "__main__":
    key = jax.random.PRNGKey(0)
    kx, kw, kb = jax.random.split(key, 3)

    # input: torch.randn(2, 2)
    x = jax.random.normal(kx, (2, 2), dtype=jnp.float32)

    # nn.Linear(2, 3): weight (3, 2), bias (3,) — deterministic synthetic init
    bound = 1.0 / jnp.sqrt(2.0)
    w = jax.random.uniform(kw, (3, 2), dtype=jnp.float32, minval=-bound, maxval=bound)
    b = jax.random.uniform(kb, (3,), dtype=jnp.float32, minval=-bound, maxval=bound)

    out = jax.block_until_ready(linear_stack(x, w, b))

    # correctness check against plain-JAX reference
    y_ref = x @ w.T + b
    ref = jnp.stack([y_ref, y_ref, y_ref], axis=0)
    assert out.shape == (3, 2, 3), out.shape
    assert jnp.allclose(out, ref, atol=1e-5, rtol=1e-5), (out, ref)

    print("KERNEL_OK")
</pallas_src>

<mosaic_0001>
module attributes {stable_mosaic.version = 11 : i64} {
  func.func @linear_stack_kernel(%arg0: i32, %arg1: memref<2x2xf32, #tpu.memory_space<vmem>>, %arg2: memref<2x3xf32, #tpu.memory_space<vmem>>, %arg3: memref<1x3xf32, #tpu.memory_space<vmem>>, %arg4: memref<3x2x3xf32, #tpu.memory_space<vmem>>) attributes {dimension_semantics = [#tpu.dimension_semantics<arbitrary>], iteration_bounds = array<i64: 1>, scalar_prefetch = 0 : i64, scratch_operands = 0 : i64, tpu.core_type = #tpu.core_type<tc>, window_params = [{pipeline_mode = #tpu.pipeline_mode<synchronous>, transform_indices = @transform_0, window_bounds = array<i64: 2, 2>}, {pipeline_mode = #tpu.pipeline_mode<synchronous>, transform_indices = @transform_1, window_bounds = array<i64: 2, 3>}, {pipeline_mode = #tpu.pipeline_mode<synchronous>, transform_indices = @transform_2, window_bounds = array<i64: 1, 3>}, {pipeline_mode = #tpu.pipeline_mode<synchronous>, transform_indices = @transform_3, window_bounds = array<i64: 3, 2, 3>}]} {
    %c0 = arith.constant 0 : index
    %c0_0 = arith.constant 0 : index
    %0 = vector.load %arg1[%c0, %c0_0] : memref<2x2xf32, #tpu.memory_space<vmem>>, vector<2x2xf32>
    %c0_1 = arith.constant 0 : index
    %c0_2 = arith.constant 0 : index
    %1 = vector.load %arg2[%c0_1, %c0_2] : memref<2x3xf32, #tpu.memory_space<vmem>>, vector<2x3xf32>
    %cst = arith.constant dense<0.000000e+00> : vector<2x3xf32>
    %2 = tpu.matmul %0, %1, %cst {dimension_numbers = #tpu.dot_dimension_numbers<[1], [0], [0], [1], [0, 0, 1, 1], [], []>} : vector<2x2xf32>, vector<2x3xf32>, vector<2x3xf32> -> vector<2x3xf32>
    %c0_3 = arith.constant 0 : index
    %c0_4 = arith.constant 0 : index
    %3 = vector.load %arg3[%c0_3, %c0_4] : memref<1x3xf32, #tpu.memory_space<vmem>>, vector<1x3xf32>
    %4 = vector.broadcast %3 : vector<1x3xf32> to vector<2x3xf32>
    %5 = arith.addf %2, %4 : vector<2x3xf32>
    %c0_5 = arith.constant 0 : index
    %c0_6 = arith.constant 0 : index
    %c0_7 = arith.constant 0 : index
    %6 = vector.load %arg4[%c0_5, %c0_6, %c0_7] : memref<3x2x3xf32, #tpu.memory_space<vmem>>, vector<1x2x3xf32>
    %7 = vector.shape_cast %6 : vector<1x2x3xf32> to vector<2x3xf32>
    %8 = vector.shape_cast %5 : vector<2x3xf32> to vector<1x2x3xf32>
    tpu.vector_store %arg4[%c0_5, %c0_6, %c0_7], %8 {strides = array<i32>} : memref<3x2x3xf32, #tpu.memory_space<vmem>>, vector<1x2x3xf32>,
    %c1 = arith.constant 1 : index
    %c0_8 = arith.constant 0 : index
    %c0_9 = arith.constant 0 : index
    %9 = vector.load %arg4[%c1, %c0_8, %c0_9] : memref<3x2x3xf32, #tpu.memory_space<vmem>>, vector<1x2x3xf32>
    %10 = vector.shape_cast %9 : vector<1x2x3xf32> to vector<2x3xf32>
    %11 = vector.shape_cast %5 : vector<2x3xf32> to vector<1x2x3xf32>
    tpu.vector_store %arg4[%c1, %c0_8, %c0_9], %11 {strides = array<i32>} : memref<3x2x3xf32, #tpu.memory_space<vmem>>, vector<1x2x3xf32>,
    %c2 = arith.constant 2 : index
    %c0_10 = arith.constant 0 : index
    %c0_11 = arith.constant 0 : index
    %12 = vector.load %arg4[%c2, %c0_10, %c0_11] : memref<3x2x3xf32, #tpu.memory_space<vmem>>, vector<1x2x3xf32>
    %13 = vector.shape_cast %12 : vector<1x2x3xf32> to vector<2x3xf32>
    %14 = vector.shape_cast %5 : vector<2x3xf32> to vector<1x2x3xf32>
    tpu.vector_store %arg4[%c2, %c0_10, %c0_11], %14 {strides = array<i32>} : memref<3x2x3xf32, #tpu.memory_space<vmem>>, vector<1x2x3xf32>,
    return
  }
  func.func @transform_0(%arg0: i32) -> (i32, i32) {
    %c0_i32 = arith.constant 0 : i32
    %c0_i32_0 = arith.constant 0 : i32
    %c0_i32_1 = arith.constant 0 : i32
    return %c0_i32, %c0_i32_0 : i32, i32
  }
  func.func @transform_1(%arg0: i32) -> (i32, i32) {
    %c0_i32 = arith.constant 0 : i32
    %c0_i32_0 = arith.constant 0 : i32
    %c0_i32_1 = arith.constant 0 : i32
    return %c0_i32, %c0_i32_0 : i32, i32
  }
  func.func @transform_2(%arg0: i32) -> (i32, i32) {
    %c0_i32 = arith.constant 0 : i32
    %c0_i32_0 = arith.constant 0 : i32
    %c0_i32_1 = arith.constant 0 : i32
    return %c0_i32, %c0_i32_0 : i32, i32
  }
  func.func @transform_3(%arg0: i32) -> (i32, i32, i32) {
    %c0_i32 = arith.constant 0 : i32
    %c0_i32_0 = arith.constant 0 : i32
    %c0_i32_1 = arith.constant 0 : i32
    %c0_i32_2 = arith.constant 0 : i32
    return %c0_i32, %c0_i32_0, %c0_i32_1 : i32, i32, i32
  }
}

</mosaic_0001>

<bundles_post_ra>
// kernel: linear_stack.1
= control target key start
LH: loop header
LB: loop body
LE: loop exit
PB: predicated region body
PF: predicated region fallthrough
CT: control target
= control target key end

     0   :  { %vm28_vm0 = vcmask 1041408   ;;  %vm24_vm1 = vcmask 15360   ;;  %v163_v1 = vmov 0.0   ;;  %vm164_vm2 = vmmov 0   ;;  %s209_s0 = inlined_call_operand.vmem [shape: f32[2,2], index: 0, kind: input, shape index: {}]   ;;  %s210_s1 = inlined_call_operand.vmem [shape: f32[2,3], index: 1, kind: input, shape index: {}]   ;;  %s211_s2 = inlined_call_operand.vmem [shape: f32[1,3], index: 2, kind: input, shape index: {}]   ;;  %s212_s3 = inlined_call_operand.hbm [shape: f32[3,2,3], index: 3, kind: output, shape index: {}]  }
   0x1   :  { %v16_v0 = vld [vmem:[%s210_s1] sm:$0x3]  ;;  %129 = vmatprep.subr.mxu0 %v163_v1  ;;  %131 = vmatprep.mubr.msk.f32.mxu0 %vm164_vm2, %v163_v1 }
   0x2   :  { %v15_v2 = vld [vmem:[%s209_s0] sm:$0x3] }
   0x3   :  { %8 = vsyncpa [#allocation3], 0  ;;  %130 = vmatpush3.msk.msra.mxu0 %vm28_vm0, %v16_v0  ;;  %s165_s16 = smov [#allocation2]   ;;  %v124_v3 = vld [vmem:[%s211_s2] ss:$0 sm:$0xff]  ;;  %vm102_vm3 = vcmask 17408  }
   0x4   :  { %132 = vmatmul.mubr.msk.f32.vlgmr.msra.gmra.mrb[0].mxu0 %vm24_vm1, %v15_v2  ;;  %s113_s17 = sshll.u32 %s165_s16, 4  ;;  %s114_s17 = int_to_ptr.vmem [resolvable:$true] %s113_s17 }
   0x5   :  { %s139_s1 = scalar_lea.vmem %s114_s17, 96  ;;  %p144_p1 = scmp.lt.s32.totalorder %s114_s17, %s114_s17 }
   0x6   :  { %p140_p0 = scmp.ne.s32.totalorder %s114_s17, %s139_s1  ;;  %p145_p2 = scmp.lt.s32.totalorder %s139_s1, %s139_s1 }
   0x8   :  { %p146_p3 = por %p145_p2, %p144_p1 }
   0xa   :  { %p147_p4 = pnand %p146_p3, %p140_p0 }
  0xd7   :  { %v98_v4 = vpop.f32.mrb[0].mxu0 }
  0xd8   :  { %v99_v5 = vadd.f32 %v124_v3, %v98_v4  ;;  %v133_v6 = vpop.f32.mrb[1].mxu0 }
  0xda   :  { %103 = vst.msk [vmem:[#allocation2] sm:$0x3] %vm102_vm3, %v99_v5  ;;  %105 = vst.msk [vmem:[#allocation2 + $0x2] sm:$0x3] %vm102_vm3, %v99_v5 }
  0xdb   :  { %107 = vst.msk [vmem:[#allocation2 + $0x4] sm:$0x3] %vm102_vm3, %v99_v5 }
  0xdc   :  { %150 = shalt.err (!%p147_p4)
}
  0xdd   :  { %s151_s21 = scalar_lea.hbm %s212_s3, 96 }
  0xde   :  { %p152_p5 = scmp.ne.s32.totalorder %s212_s3, %s151_s21  ;;  %p155_p6 = scmp.lt.u32.totalorder %s151_s21, %s212_s3 }
  0xe0   :  { %p157_p7 = pnand %p155_p6, %p152_p5 }
  0xe2   :  { %160 = shalt.err (!%p157_p7)
}
  0xe3   :  { %s166_s25 = smov 32   ;;  %s167_s26 = smov 2  }
  0xe4   :  { %119 = dma.vmem_to_hbm [thread:$0]  %s114_s17, 96, %s212_s3, [#allocation3], %s166_s25, %s166_s25, %s167_s26  }
  0xe5   :  { %161 = dma.done.wait [#allocation3], 96  }
  0xe6   :  { %162 = vsyncadd [#allocation3], 4294967200 }
  0xe7   :  { %123 = vsyncpa [#allocation3], 1 }

</bundles_post_ra>
